<compile_context>
chip_gen: v6e
topology: v6e:2x2x1
jax: 0.10.0
libtpu: 0.0.40
codegen_flags: <defaults>
</compile_context>

<pallas_src>
import jax
import jax.numpy as jnp
from jax.experimental import pallas as pl
from jax.experimental.pallas import tpu as pltpu


# ----------------------------- kernel ----------------------------------------

def _numemb_kernel(x_ref, w_ref, b_ref, o_ref):
    # (TB, N) @ (N, N_out*D) on the MXU, + sublane-broadcast bias add,
    # then a single lane-dense store of the (TB, N_out*D) tile.
    o_ref[...] = (
        jnp.dot(x_ref[...], w_ref[...], preferred_element_type=jnp.float32)
        + b_ref[...]
    )


# ----------------------------- wrapper ----------------------------------------

def _pick_batch_tile(B, nd):
    """Largest batch tile that is a multiple of 8, divides B, and keeps the
    double-buffered f32 output stream within a conservative VMEM budget
    (safe for v7x's smaller scoped VMEM)."""
    cap = max(8, (4 * 1024 * 1024) // (nd * 4 * 2))   # ~4 MiB / output stream
    cap = min(cap, 512)
    for tb in (512, 256, 128, 64, 32, 16, 8):
        if tb <= cap and B % tb == 0:
            return tb
    # Tiny or ragged batch: use the full extent as a single block (always legal).
    return B


def numerical_embedder(x, params):
    """x: (B, N) float32. params dict with 'weights' (N_out, D), 'biases'
    (N_out, D) and optionally 'w_lin' (N, N_out), 'b_lin' (1, N_out).
    Returns (B, N_out, D) float32."""
    x = x.astype(jnp.float32)
    B, N = x.shape
    weights = params["weights"].astype(jnp.float32)
    biases = params["biases"].astype(jnp.float32)
    N_out, D = weights.shape
    ND = N_out * D

    if "w_lin" in params:
        # Fold the Linear into the embedding: exact elementwise precompute.
        w_lin = params["w_lin"].astype(jnp.float32)          # (N, N_out)
        b_lin = params["b_lin"].astype(jnp.float32)          # (1, N_out)
        w_comb = (w_lin[:, :, None] * weights[None, :, :]).reshape(N, ND)
        b_comb = (b_lin[0, :, None] * weights + biases).reshape(1, ND)
    else:
        # Block-diagonal expansion: per-feature scale as one MXU matmul.
        eye = jnp.eye(N, dtype=jnp.float32)
        w_comb = (eye[:, :, None] * weights[None, :, :]).reshape(N, ND)
        b_comb = biases.reshape(1, ND)

    tb = _pick_batch_tile(B, ND)
    grid = (B // tb,)

    cost = pl.CostEstimate(
        flops=2 * B * N * ND + B * ND,
        transcendentals=0,
        bytes_accessed=4 * (B * N + N * ND + ND + B * ND),
    )

    # TODO(synk): if downstream accepts bf16, cast at the store to halve the
    # HBM writeback (kernel is output-write bound); kept f32 to match the spec.
    out_flat = pl.pallas_call(
        _numemb_kernel,
        out_shape=jax.ShapeDtypeStruct((B, ND), jnp.float32),
        grid=grid,
        in_specs=[
            pl.BlockSpec((tb, N), lambda i: (i, 0)),     # batch-tiled input
            pl.BlockSpec((N, ND), lambda i: (0, 0)),     # resident fused weight
            pl.BlockSpec((1, ND), lambda i: (0, 0)),     # resident fused bias
        ],
        out_specs=pl.BlockSpec((tb, ND), lambda i: (i, 0)),  # lane-dense output
        compiler_params=pltpu.CompilerParams(
            dimension_semantics=("parallel",)),
        cost_estimate=cost,
    )(x, w_comb, b_comb)

    return out_flat.reshape(B, N_out, D)


# ----------------------------- reference --------------------------------------

def numerical_embedder_ref(x, params):
    if "w_lin" in params:
        x = x @ params["w_lin"] + params["b_lin"]
    return x[:, :, None] * params["weights"][None] + params["biases"][None]


# ----------------------------- init / demo ------------------------------------

def init_params(key, dim, num_numerical_types, shrink_dim=False):
    keys = jax.random.split(key, 4)
    params = {}
    n = num_numerical_types
    if shrink_dim:
        n2 = num_numerical_types // 2
        # nn.Linear(N, N//2): weight stored already transposed to (N, N//2)
        params["w_lin"] = jax.random.normal(keys[2], (n, n2), jnp.float32) * 0.1
        params["b_lin"] = jax.random.normal(keys[3], (1, n2), jnp.float32) * 0.1
        n = n2
    params["weights"] = jax.random.normal(keys[0], (n, dim), jnp.float32)
    params["biases"] = jax.random.normal(keys[1], (n, dim), jnp.float32)
    return params


if __name__ == "__main__":
    key = jax.random.PRNGKey(0)
    k_x, k_p1, k_p2 = jax.random.split(key, 3)

    B, N, D = 2, 8, 32
    x = jax.random.normal(k_x, (B, N), jnp.float32)

    ok = True

    # shrink_dim = False
    p0 = init_params(k_p1, D, N, shrink_dim=False)
    out0 = jax.block_until_ready(numerical_embedder(x, p0))
    ref0 = numerical_embedder_ref(x, p0)
    ok &= bool(jnp.allclose(out0, ref0, atol=1e-5, rtol=1e-5))
    assert out0.shape == (B, N, D)

    # shrink_dim = True (Linear folded into the fused matmul)
    p1 = init_params(k_p2, D, N, shrink_dim=True)
    out1 = jax.block_until_ready(numerical_embedder(x, p1))
    ref1 = numerical_embedder_ref(x, p1)
    ok &= bool(jnp.allclose(out1, ref1, atol=1e-5, rtol=1e-5))
    assert out1.shape == (B, N // 2, D)

    if ok:
        print("KERNEL_OK")
</pallas_src>

<mosaic_0001>
module attributes {stable_mosaic.version = 11 : i64} {
  func.func @_numemb_kernel(%arg0: i32, %arg1: memref<2x8xf32, #tpu.memory_space<vmem>>, %arg2: memref<8x256xf32, #tpu.memory_space<vmem>>, %arg3: memref<1x256xf32, #tpu.memory_space<vmem>>, %arg4: memref<2x256xf32, #tpu.memory_space<vmem>>) attributes {dimension_semantics = [#tpu.dimension_semantics<parallel>], iteration_bounds = array<i64: 1>, scalar_prefetch = 0 : i64, scratch_operands = 0 : i64, tpu.core_type = #tpu.core_type<tc>, window_params = [{transform_indices = @transform_0, window_bounds = array<i64: 2, 8>}, {pipeline_mode = #tpu.pipeline_mode<synchronous>, transform_indices = @transform_1, window_bounds = array<i64: 8, 256>}, {pipeline_mode = #tpu.pipeline_mode<synchronous>, transform_indices = @transform_2, window_bounds = array<i64: 1, 256>}, {transform_indices = @transform_3, window_bounds = array<i64: 2, 256>}]} {
    %c0 = arith.constant 0 : index
    %c0_0 = arith.constant 0 : index
    %0 = vector.load %arg1[%c0, %c0_0] : memref<2x8xf32, #tpu.memory_space<vmem>>, vector<2x8xf32>
    %c0_1 = arith.constant 0 : index
    %c0_2 = arith.constant 0 : index
    %1 = vector.load %arg2[%c0_1, %c0_2] : memref<8x256xf32, #tpu.memory_space<vmem>>, vector<8x256xf32>
    %cst = arith.constant dense<0.000000e+00> : vector<2x256xf32>
    %2 = tpu.matmul %0, %1, %cst {dimension_numbers = #tpu.dot_dimension_numbers<[1], [0], [0], [1], [0, 0, 1, 1], [], []>} : vector<2x8xf32>, vector<8x256xf32>, vector<2x256xf32> -> vector<2x256xf32>
    %c0_3 = arith.constant 0 : index
    %c0_4 = arith.constant 0 : index
    %3 = vector.load %arg3[%c0_3, %c0_4] : memref<1x256xf32, #tpu.memory_space<vmem>>, vector<1x256xf32>
    %4 = vector.broadcast %3 : vector<1x256xf32> to vector<2x256xf32>
    %5 = arith.addf %2, %4 : vector<2x256xf32>
    %c0_5 = arith.constant 0 : index
    %c0_6 = arith.constant 0 : index
    %6 = vector.load %arg4[%c0_5, %c0_6] : memref<2x256xf32, #tpu.memory_space<vmem>>, vector<2x256xf32>
    tpu.vector_store %arg4[%c0_5, %c0_6], %5 {strides = array<i32>} : memref<2x256xf32, #tpu.memory_space<vmem>>, vector<2x256xf32>,
    return
  }
  func.func @transform_0(%arg0: i32) -> (i32, i32) {
    %c0_i32 = arith.constant 0 : i32
    %c0_i32_0 = arith.constant 0 : i32
    return %arg0, %c0_i32 : i32, i32
  }
  func.func @transform_1(%arg0: i32) -> (i32, i32) {
    %c0_i32 = arith.constant 0 : i32
    %c0_i32_0 = arith.constant 0 : i32
    %c0_i32_1 = arith.constant 0 : i32
    return %c0_i32, %c0_i32_0 : i32, i32
  }
  func.func @transform_2(%arg0: i32) -> (i32, i32) {
    %c0_i32 = arith.constant 0 : i32
    %c0_i32_0 = arith.constant 0 : i32
    %c0_i32_1 = arith.constant 0 : i32
    return %c0_i32, %c0_i32_0 : i32, i32
  }
  func.func @transform_3(%arg0: i32) -> (i32, i32) {
    %c0_i32 = arith.constant 0 : i32
    %c0_i32_0 = arith.constant 0 : i32
    return %arg0, %c0_i32 : i32, i32
  }
}

</mosaic_0001>

<bundles_post_ra>
// kernel: tpu_custom_call.1
= control target key start
LH: loop header
LB: loop body
LE: loop exit
PB: predicated region body
PF: predicated region fallthrough
CT: control target
= control target key end

     0   :  { %8 = vsyncpa [#allocation3], 0  ;;  %s265_s0 = inlined_call_operand.hbm [shape: f32[2,8], index: 0, kind: input, shape index: {}]   ;;  %s266_s1 = inlined_call_operand.hbm [shape: f32[8,256], index: 1, kind: input, shape index: {}]   ;;  %s267_s2 = inlined_call_operand.vmem [shape: f32[1,256], index: 2, kind: input, shape index: {}]   ;;  %s268_s3 = inlined_call_operand.hbm [shape: f32[2,256], index: 3, kind: output, shape index: {}]  }
   0x1   :  { %9 = vsyncpa [#allocation6], 0 }
   0x2   :  { %10 = vsyncpa [#allocation4], 0  ;;  %s229_s12 = smov [#allocation2]   ;;  %s230_s14 = smov [#allocation5]  }
   0x3   :  { %s17_s13 = sshll.u32 %s229_s12, 4  ;;  %s27_s15 = sshll.u32 %s230_s14, 4  ;;  %s18_s13 = int_to_ptr.vmem [resolvable:$true] %s17_s13  ;;  %s28_s15 = int_to_ptr.vmem [resolvable:$true] %s27_s15 }
   0x4   :  { %s171_s16 = scalar_lea.vmem %s18_s13, 32  ;;  %p176_p1 = scmp.lt.s32.totalorder %s18_s13, %s18_s13 }
   0x5   :  { %p172_p0 = scmp.ne.s32.totalorder %s18_s13, %s171_s16  ;;  %p177_p2 = scmp.lt.s32.totalorder %s171_s16, %s171_s16 }
   0x7   :  { %p178_p3 = por %p177_p2, %p176_p1 }
   0x9   :  { %p179_p4 = pnand %p178_p3, %p172_p0 }
   0xb   :  { %182 = shalt.err (!%p179_p4)
}
   0xc   :  { %20 = dma.hbm_to_vmem [thread:$0]  %s265_s0, 32, %s18_s13, [#allocation3]  }
   0xd   :  { %s191_s19 = scalar_lea.vmem %s28_s15, 256  ;;  %p196_p6 = scmp.lt.s32.totalorder %s28_s15, %s28_s15 }
   0xe   :  { %p192_p5 = scmp.ne.s32.totalorder %s28_s15, %s191_s19  ;;  %p197_p7 = scmp.lt.s32.totalorder %s191_s19, %s191_s19 }
  0x10   :  { %p198_p8 = por %p197_p7, %p196_p6 }
  0x12   :  { %p199_p9 = pnand %p198_p8, %p192_p5 }
  0x14   :  { %202 = shalt.err (!%p199_p9)
}
  0x15   :  { %30 = dma.hbm_to_vmem [thread:$0]  %s266_s1, 256, %s28_s15, [#allocation6]  }
  0x16   :  { %223 = dma.done.wait [#allocation3], 32  }
  0x17   :  { %224 = vsyncadd [#allocation3], 4294967264 }
  0x18   :  { %225 = dma.done.wait [#allocation6], 256  }
  0x19   :  { %226 = vsyncadd [#allocation6], 4294967040  ;;  %v231_v0 = vmov 0.0   ;;  %v41_v1 = vld [vmem:[#allocation5 + $0x8] sm:$0xff]  ;;  %v40_v2 = vld [vmem:[#allocation5] sm:$0xff]  ;;  %vm54_vm0 = vcmask 64512   ;;  %v44_v4 = vlaneseq }
  0x1a   :  { %122 = vmatprep.mubr.f32.mxu0 %v231_v0  ;;  %v39_v3 = vld [vmem:[#allocation2] sm:$0x3]  ;;  %88 = vmatprep.subr.mxu0 %v41_v1  ;;  %s232_s1 = smov [#allocation7]  }
  0x1b   :  { %89 = vmatpush1.msra.mxu0 %v40_v2  ;;  %v45_v5 = vshrl.u32 %v44_v4, 7  ;;  %v42_v8 = vld [vmem:[%s267_s2] sm:$0x3]  ;;  %s147_s23 = sshll.u32 %s232_s1, 4  ;;  %s148_s23 = int_to_ptr.vmem [resolvable:$true] %s147_s23 }
  0x1c   :  { %157 = vmatmul.mubr.msk.f32.vlgmr.msra.gmra.mxu0 %vm54_vm0, %v39_v3  ;;  %s203_s24 = scalar_lea.vmem %s148_s23, 64  ;;  %p208_p11 = scmp.lt.s32.totalorder %s148_s23, %s148_s23 }
  0x1d   :  { %v46_v6 = vsub.s32 0, %v45_v5  ;;  %v50_v7 = vsub.s32 1, %v45_v5  ;;  %p204_p10 = scmp.ne.s32.totalorder %s148_s23, %s203_s24  ;;  %p209_p12 = scmp.lt.s32.totalorder %s203_s24, %s203_s24 }
  0x1f   :  { %v47_v9 = vrot.slane %v42_v8, %v46_v6  ;;  %v51_v10 = vrot.slane %v42_v8, %v50_v7  ;;  %p210_p13 = por %p209_p12, %p208_p11 }
  0x21   :  { %p211_p0 = pnand %p210_p13, %p204_p10 }
  0xdc   :  { %v124_v11 = vpop.f32.mrf.mxu0 }
  0xdd   :  { %v125_v13 = vadd.f32 %v124_v11, %v47_v9 }
  0xde   :  { %v126_v12 = vpop.f32.mrf.mxu0 }
  0xdf   :  { %v127_v14 = vadd.f32 %v126_v12, %v51_v10 }
  0xe1   :  { %v131_v15 = vcombine.low %v125_v13, %v127_v14 }
  0xe3   :  { %158 = vst.sshfl [vmem:[#allocation7] sm:$0x33 pattern:$0x76325410] %v131_v15 }
  0xe4   :  { %214 = shalt.err (!%p211_p0)
}
  0xe5   :  { %150 = dma.vmem_to_hbm [thread:$0]  %s148_s23, 64, %s268_s3, [#allocation4]  }
  0xe6   :  { %227 = dma.done.wait [#allocation4], 64  }
  0xe7   :  { %228 = vsyncadd [#allocation4], 4294967232 }
  0xe8   :  { %154 = vsyncpa [#allocation3], 1 }
  0xe9   :  { %155 = vsyncpa [#allocation6], 1 }
  0xea   :  { %156 = vsyncpa [#allocation4], 1 }

</bundles_post_ra>
